<compile_context>
chip_gen: v5e
topology: v5e:2x2
jax: 0.10.0
libtpu: 0.0.40
codegen_flags: <defaults>
</compile_context>

<pallas_src>
import functools

import jax
import jax.numpy as jnp
from jax import lax
from jax.experimental import pallas as pl
from jax.experimental.pallas import tpu as pltpu

SELU_ALPHA = 1.6732632423543772
SELU_SCALE = 1.0507009873554805


def _selu(x):
    # exp only ever sees non-positive arguments -> no inf intermediates.
    # Runs in x.dtype (bf16 on v6e/v7x fast path, f32 otherwise).
    neg = SELU_ALPHA * (jnp.exp(jnp.minimum(x, 0.0)) - 1.0)
    return SELU_SCALE * jnp.where(x > 0, x, neg)


def _sigmoid(x, approx):
    # Numerically-stable logistic: never exponentiates a positive argument.
    # The divide goes to the (otherwise idle) EUP as an approximate
    # reciprocal on the fast path.
    e = jnp.exp(-jnp.abs(x))
    r = pl.reciprocal(1.0 + e, approx=approx)
    return jnp.where(x >= 0, r, e * r)


def _mlp_kernel(z_ref, w1_ref, b1_ref, w2_ref, b2_ref, w3_ref, b3_ref, o_ref,
                *, compute_dtype, num_attributes, precision):
    fast = jnp.dtype(compute_dtype) == jnp.dtype(jnp.bfloat16)

    x = z_ref[...]                                   # (tb, 16) f32, batch on sublanes

    # Layer 1: (64,16) . (tb,16)^T -> (64, tb).  Batch lands on the LANE axis
    # via the MXU's native contract-both-minors (A.B^T) form — no materialized
    # transpose — so every intermediate below is lane-dense.
    h = lax.dot_general(w1_ref[...], x, (((1,), (1,)), ((), ())),
                        preferred_element_type=jnp.float32,
                        precision=precision)
    h = _selu((h + b1_ref[...]).astype(compute_dtype))      # Dropout = identity (eval)

    # Layer 2: (32,64) . (64,tb) -> (32, tb).
    w2 = w2_ref[...].astype(compute_dtype)                  # tiny (~4 vregs) per-step cast
    h = jnp.dot(w2, h, preferred_element_type=jnp.float32,
                precision=precision) + b2_ref[...]
    h = _selu(h.astype(compute_dtype))                       # Dropout = identity (eval)

    # Layer 3: (A_pad,32) . (32,tb) -> (A_pad, tb); rows >= num_attributes are
    # zero pads (added host-side so A_pad == 8, a full sublane tile).
    w3 = w3_ref[...].astype(compute_dtype)
    y = jnp.dot(w3, h, preferred_element_type=jnp.float32,
                precision=precision) + b3_ref[...]
    p = _sigmoid(y, approx=fast)                              # (A_pad, tb) f32, lane-dense

    # Reorient to the (B, A) output layout in-kernel: (A_pad, tb) -> (tb, A_pad)
    # is a native-tile XLU transpose (A_pad == 8 sublanes, tb multiple of 128 or
    # full extent), then keep the first num_attributes lanes.  Output bytes are
    # tiny (4*A B per sample), so the sublane-major store is cheap in absolute
    # terms and it removes the wrapper-side transpose/slice HBM passes.
    o_ref[...] = p.T[:, :num_attributes].astype(o_ref.dtype)


def _round_up(x, m):
    return ((x + m - 1) // m) * m


def _default_compute_dtype():
    """bf16 elementwise on chips with bf16 VPU/EUP paths (v6e / v7x and newer);
    f32 on v5 and older where a bf16 cast would only add work."""
    try:
        kind = jax.devices()[0].device_kind.lower()
    except Exception:
        return jnp.float32
    if any(tag in kind for tag in ("v2", "v3", "v4", "v5")):
        return jnp.float32
    return jnp.bfloat16


def _pick_batch_tile(batch, block_b):
    """Batch tile (sublane dim of the input block, lane dim of the compute)."""
    if batch >= 256:
        # At least 2 balanced grid steps so ("parallel",) actually splits the
        # batch across v7x's two TensorCores; multiple of 128 for MXU/lane
        # efficiency; capped by block_b for bounded VMEM.
        return min(block_b, _round_up(batch, 256) // 2)
    if batch >= 8:
        return _round_up(batch, 8)       # single small tile
    return batch                         # block == full (tiny) array extent


def image_fader_discriminator(z, params, *, block_b=4096, compute_dtype=None,
                              precision=None):
    """Forward pass of ImageFaderDiscriminator.

    z: (B, 16) float32.
    params: PyTorch-layout weights/biases:
        w1 (64,16)  b1 (64,1)   w2 (32,64)  b2 (32,1)   w3 (A,32)  b3 (A,1)
    Returns sigmoid(MLP(z)): (B, A) float32.
    """
    if compute_dtype is None:
        compute_dtype = _default_compute_dtype()
    if z.dtype != jnp.float32:
        z = z.astype(jnp.float32)

    batch = z.shape[0]
    w1, b1 = params["w1"], params["b1"]
    w2, b2 = params["w2"], params["b2"]
    w3, b3 = params["w3"], params["b3"]
    num_attributes = w3.shape[0]

    # Pad the last layer's output dim to a full sublane tile (8) so the final
    # in-kernel transpose runs on a native (8, tb) shape.  ~100 B, one-time.
    a_pad = _round_up(num_attributes, 8)
    if a_pad != num_attributes:
        w3 = jnp.pad(w3, ((0, a_pad - num_attributes), (0, 0)))
        b3 = jnp.pad(b3, ((0, a_pad - num_attributes), (0, 0)))

    tb = _pick_batch_tile(batch, block_b)
    grid = (pl.cdiv(batch, tb),)   # ragged last tile handled by Pallas masking;
                                   # batch columns are independent, so garbage
                                   # in the padded lanes never contaminates
                                   # valid outputs and is never written back.

    kernel = functools.partial(
        _mlp_kernel,
        compute_dtype=compute_dtype,
        num_attributes=num_attributes,
        precision=precision,
    )

    pinned = lambda shape: pl.BlockSpec(shape, lambda i: (0, 0))

    return pl.pallas_call(
        kernel,
        out_shape=jax.ShapeDtypeStruct((batch, num_attributes), jnp.float32),
        grid=grid,
        in_specs=[
            pl.BlockSpec((tb, 16), lambda i: (i, 0)),    # batch-tiled input, native layout
            pinned(w1.shape), pinned(b1.shape),          # params: DMA'd once,
            pinned(w2.shape), pinned(b2.shape),          # VMEM-resident across
            pinned(w3.shape), pinned(b3.shape),          # all grid steps
        ],
        out_specs=pl.BlockSpec((tb, num_attributes), lambda i: (i, 0)),
        compiler_params=pltpu.CompilerParams(
            dimension_semantics=("parallel",),           # megacore split on v7x
            vmem_limit_bytes=32 * 1024 * 1024,
        ),
    )(z, w1, b1, w2, b2, w3, b3)


def init_params(key, num_attributes):
    """PyTorch Linear default init: U(-1/sqrt(fan_in), 1/sqrt(fan_in)).
    Weights in PyTorch layout (out_features, in_features); biases (out, 1)."""
    def linear(k, fan_in, fan_out):
        kw, kb = jax.random.split(k)
        bound = 1.0 / (float(fan_in) ** 0.5)
        w = jax.random.uniform(kw, (fan_out, fan_in), jnp.float32, -bound, bound)
        b = jax.random.uniform(kb, (fan_out, 1), jnp.float32, -bound, bound)
        return w, b

    k1, k2, k3 = jax.random.split(key, 3)
    w1, b1 = linear(k1, 16, 64)
    w2, b2 = linear(k2, 64, 32)
    w3, b3 = linear(k3, 32, num_attributes)
    return dict(w1=w1, b1=b1, w2=w2, b2=b2, w3=w3, b3=b3)


def reference(z, params):
    """Pure-JAX f32 reference (standard (B, F) orientation)."""
    h = _selu(z @ params["w1"].T + params["b1"].T)
    h = _selu(h @ params["w2"].T + params["b2"].T)
    h = h @ params["w3"].T + params["b3"].T
    return jax.nn.sigmoid(h)


if __name__ == "__main__":
    key = jax.random.PRNGKey(0)
    k_params, k_z1, k_z2 = jax.random.split(key, 3)

    num_attributes = 4
    params = init_params(k_params, num_attributes)

    # Small batch consistent with the module's (B, 16) input; strict f32 path.
    z = jax.random.normal(k_z1, (8, 16), jnp.float32)
    out = jax.block_until_ready(
        image_fader_discriminator(z, params, compute_dtype=jnp.float32))
    ref = reference(z, params)
    assert out.shape == (8, num_attributes)
    assert jnp.allclose(out, ref, atol=5e-5, rtol=5e-5), "mismatch (B=8, f32)"

    # Larger ragged batch: multi-step grid (>=2 steps for the v7x megacore
    # split), partial last tile, and the auto per-device compute dtype
    # (bf16 elementwise on v6e/v7x, f32 on v5e and older).
    z2 = jax.random.normal(k_z2, (300, 16), jnp.float32)
    out2 = jax.block_until_ready(image_fader_discriminator(z2, params))
    ref2 = reference(z2, params)
    assert out2.shape == (300, num_attributes)
    tol = 5e-5 if _default_compute_dtype() == jnp.float32 else 3e-2
    assert jnp.allclose(out2, ref2, atol=tol, rtol=tol), "mismatch (B=300)"

    print("KERNEL_OK")
</pallas_src>

<mosaic_0001>
module attributes {stable_mosaic.version = 11 : i64} {
  func.func @_mlp_kernel(%arg0: i32, %arg1: memref<8x16xf32, #tpu.memory_space<vmem>>, %arg2: memref<64x16xf32, #tpu.memory_space<vmem>>, %arg3: memref<64x1xf32, #tpu.memory_space<vmem>>, %arg4: memref<32x64xf32, #tpu.memory_space<vmem>>, %arg5: memref<32x1xf32, #tpu.memory_space<vmem>>, %arg6: memref<8x32xf32, #tpu.memory_space<vmem>>, %arg7: memref<8x1xf32, #tpu.memory_space<vmem>>, %arg8: memref<8x4xf32, #tpu.memory_space<vmem>>) attributes {dimension_semantics = [#tpu.dimension_semantics<parallel>], iteration_bounds = array<i64: 1>, scalar_prefetch = 0 : i64, scratch_operands = 0 : i64, tpu.core_type = #tpu.core_type<tc>, window_params = [{transform_indices = @transform_0, window_bounds = array<i64: 8, 16>}, {pipeline_mode = #tpu.pipeline_mode<synchronous>, transform_indices = @transform_1, window_bounds = array<i64: 64, 16>}, {pipeline_mode = #tpu.pipeline_mode<synchronous>, transform_indices = @transform_2, window_bounds = array<i64: 64, 1>}, {pipeline_mode = #tpu.pipeline_mode<synchronous>, transform_indices = @transform_3, window_bounds = array<i64: 32, 64>}, {pipeline_mode = #tpu.pipeline_mode<synchronous>, transform_indices = @transform_4, window_bounds = array<i64: 32, 1>}, {pipeline_mode = #tpu.pipeline_mode<synchronous>, transform_indices = @transform_5, window_bounds = array<i64: 8, 32>}, {pipeline_mode = #tpu.pipeline_mode<synchronous>, transform_indices = @transform_6, window_bounds = array<i64: 8, 1>}, {transform_indices = @transform_7, window_bounds = array<i64: 8, 4>}]} {
    %c0 = arith.constant 0 : index
    %c0_0 = arith.constant 0 : index
    %0 = vector.load %arg1[%c0, %c0_0] : memref<8x16xf32, #tpu.memory_space<vmem>>, vector<8x16xf32>
    %c0_1 = arith.constant 0 : index
    %c0_2 = arith.constant 0 : index
    %1 = vector.load %arg2[%c0_1, %c0_2] : memref<64x16xf32, #tpu.memory_space<vmem>>, vector<64x16xf32>
    %cst = arith.constant dense<0.000000e+00> : vector<64x8xf32>
    %2 = tpu.matmul %1, %0, %cst {dimension_numbers = #tpu.dot_dimension_numbers<[1], [1], [0], [0], [0, 0, 1, 0], [], []>} : vector<64x16xf32>, vector<8x16xf32>, vector<64x8xf32> -> vector<64x8xf32>
    %c0_3 = arith.constant 0 : index
    %c0_4 = arith.constant 0 : index
    %3 = vector.load %arg3[%c0_3, %c0_4] : memref<64x1xf32, #tpu.memory_space<vmem>>, vector<64x1xf32>
    %4 = vector.broadcast %3 : vector<64x1xf32> to vector<64x8xf32>
    %5 = arith.addf %2, %4 : vector<64x8xf32>
    %cst_5 = arith.constant 0.000000e+00 : f32
    %6 = vector.broadcast %cst_5 : f32 to vector<64x8xf32>
    %7 = arith.minimumf %5, %6 : vector<64x8xf32>
    %8 = math.exp %7 : vector<64x8xf32>
    %cst_6 = arith.constant 1.000000e+00 : f32
    %9 = vector.broadcast %cst_6 : f32 to vector<64x8xf32>
    %10 = arith.subf %8, %9 : vector<64x8xf32>
    %cst_7 = arith.constant 1.67326319 : f32
    %11 = vector.broadcast %cst_7 : f32 to vector<64x8xf32>
    %12 = arith.mulf %11, %10 : vector<64x8xf32>
    %cst_8 = arith.constant 0.000000e+00 : f32
    %13 = vector.broadcast %cst_8 : f32 to vector<64x8xf32>
    %14 = arith.cmpf ogt, %5, %13 : vector<64x8xf32>
    %15 = arith.select %14, %5, %12 : vector<64x8xi1>, vector<64x8xf32>
    %cst_9 = arith.constant 1.05070102 : f32
    %16 = vector.broadcast %cst_9 : f32 to vector<64x8xf32>
    %17 = arith.mulf %16, %15 : vector<64x8xf32>
    %c0_10 = arith.constant 0 : index
    %c0_11 = arith.constant 0 : index
    %18 = vector.load %arg4[%c0_10, %c0_11] : memref<32x64xf32, #tpu.memory_space<vmem>>, vector<32x64xf32>
    %cst_12 = arith.constant dense<0.000000e+00> : vector<32x8xf32>
    %19 = tpu.matmul %18, %17, %cst_12 {dimension_numbers = #tpu.dot_dimension_numbers<[1], [0], [0], [1], [0, 0, 1, 1], [], []>} : vector<32x64xf32>, vector<64x8xf32>, vector<32x8xf32> -> vector<32x8xf32>
    %c0_13 = arith.constant 0 : index
    %c0_14 = arith.constant 0 : index
    %20 = vector.load %arg5[%c0_13, %c0_14] : memref<32x1xf32, #tpu.memory_space<vmem>>, vector<32x1xf32>
    %21 = vector.broadcast %20 : vector<32x1xf32> to vector<32x8xf32>
    %22 = arith.addf %19, %21 : vector<32x8xf32>
    %cst_15 = arith.constant 0.000000e+00 : f32
    %23 = vector.broadcast %cst_15 : f32 to vector<32x8xf32>
    %24 = arith.minimumf %22, %23 : vector<32x8xf32>
    %25 = math.exp %24 : vector<32x8xf32>
    %cst_16 = arith.constant 1.000000e+00 : f32
    %26 = vector.broadcast %cst_16 : f32 to vector<32x8xf32>
    %27 = arith.subf %25, %26 : vector<32x8xf32>
    %cst_17 = arith.constant 1.67326319 : f32
    %28 = vector.broadcast %cst_17 : f32 to vector<32x8xf32>
    %29 = arith.mulf %28, %27 : vector<32x8xf32>
    %cst_18 = arith.constant 0.000000e+00 : f32
    %30 = vector.broadcast %cst_18 : f32 to vector<32x8xf32>
    %31 = arith.cmpf ogt, %22, %30 : vector<32x8xf32>
    %32 = arith.select %31, %22, %29 : vector<32x8xi1>, vector<32x8xf32>
    %cst_19 = arith.constant 1.05070102 : f32
    %33 = vector.broadcast %cst_19 : f32 to vector<32x8xf32>
    %34 = arith.mulf %33, %32 : vector<32x8xf32>
    %c0_20 = arith.constant 0 : index
    %c0_21 = arith.constant 0 : index
    %35 = vector.load %arg6[%c0_20, %c0_21] : memref<8x32xf32, #tpu.memory_space<vmem>>, vector<8x32xf32>
    %cst_22 = arith.constant dense<0.000000e+00> : vector<8x8xf32>
    %36 = tpu.matmul %35, %34, %cst_22 {dimension_numbers = #tpu.dot_dimension_numbers<[1], [0], [0], [1], [0, 0, 1, 1], [], []>} : vector<8x32xf32>, vector<32x8xf32>, vector<8x8xf32> -> vector<8x8xf32>
    %c0_23 = arith.constant 0 : index
    %c0_24 = arith.constant 0 : index
    %37 = vector.load %arg7[%c0_23, %c0_24] : memref<8x1xf32, #tpu.memory_space<vmem>>, vector<8x1xf32>
    %38 = vector.broadcast %37 : vector<8x1xf32> to vector<8x8xf32>
    %39 = arith.addf %36, %38 : vector<8x8xf32>
    %40 = math.absf %39 : vector<8x8xf32>
    %cst_25 = arith.constant 0.000000e+00 : f32
    %41 = vector.broadcast %cst_25 : f32 to vector<8x8xf32>
    %42 = arith.subf %41, %40 : vector<8x8xf32>
    %43 = math.exp %42 : vector<8x8xf32>
    %cst_26 = arith.constant 1.000000e+00 : f32
    %44 = vector.broadcast %cst_26 : f32 to vector<8x8xf32>
    %45 = arith.addf %44, %43 : vector<8x8xf32>
    %46 = tpu.reciprocal %45 : vector<8x8xf32> -> vector<8x8xf32>
    %cst_27 = arith.constant 0.000000e+00 : f32
    %47 = vector.broadcast %cst_27 : f32 to vector<8x8xf32>
    %48 = arith.cmpf oge, %39, %47 : vector<8x8xf32>
    %49 = arith.mulf %43, %46 : vector<8x8xf32>
    %50 = arith.select %48, %46, %49 : vector<8x8xi1>, vector<8x8xf32>
    %51 = tpu.transpose %50, [1, 0] : vector<8x8xf32> -> vector<8x8xf32>
    %52 = vector.extract_strided_slice %51 {offsets = [0, 0], sizes = [8, 4], strides = [1, 1]} : vector<8x8xf32> to vector<8x4xf32>
    %c0_28 = arith.constant 0 : index
    %c0_29 = arith.constant 0 : index
    %53 = vector.load %arg8[%c0_28, %c0_29] : memref<8x4xf32, #tpu.memory_space<vmem>>, vector<8x4xf32>
    tpu.vector_store %arg8[%c0_28, %c0_29], %52 {strides = array<i32>} : memref<8x4xf32, #tpu.memory_space<vmem>>, vector<8x4xf32>,
    return
  }
  func.func @transform_0(%arg0: i32) -> (i32, i32) {
    %c0_i32 = arith.constant 0 : i32
    %c0_i32_0 = arith.constant 0 : i32
    return %arg0, %c0_i32 : i32, i32
  }
  func.func @transform_1(%arg0: i32) -> (i32, i32) {
    %c0_i32 = arith.constant 0 : i32
    %c0_i32_0 = arith.constant 0 : i32
    %c0_i32_1 = arith.constant 0 : i32
    return %c0_i32, %c0_i32_0 : i32, i32
  }
  func.func @transform_2(%arg0: i32) -> (i32, i32) {
    %c0_i32 = arith.constant 0 : i32
    %c0_i32_0 = arith.constant 0 : i32
    %c0_i32_1 = arith.constant 0 : i32
    return %c0_i32, %c0_i32_0 : i32, i32
  }
  func.func @transform_3(%arg0: i32) -> (i32, i32) {
    %c0_i32 = arith.constant 0 : i32
    %c0_i32_0 = arith.constant 0 : i32
    %c0_i32_1 = arith.constant 0 : i32
    return %c0_i32, %c0_i32_0 : i32, i32
  }
  func.func @transform_4(%arg0: i32) -> (i32, i32) {
    %c0_i32 = arith.constant 0 : i32
    %c0_i32_0 = arith.constant 0 : i32
    %c0_i32_1 = arith.constant 0 : i32
    return %c0_i32, %c0_i32_0 : i32, i32
  }
  func.func @transform_5(%arg0: i32) -> (i32, i32) {
    %c0_i32 = arith.constant 0 : i32
    %c0_i32_0 = arith.constant 0 : i32
    %c0_i32_1 = arith.constant 0 : i32
    return %c0_i32, %c0_i32_0 : i32, i32
  }
  func.func @transform_6(%arg0: i32) -> (i32, i32) {
    %c0_i32 = arith.constant 0 : i32
    %c0_i32_0 = arith.constant 0 : i32
    %c0_i32_1 = arith.constant 0 : i32
    return %c0_i32, %c0_i32_0 : i32, i32
  }
  func.func @transform_7(%arg0: i32) -> (i32, i32) {
    %c0_i32 = arith.constant 0 : i32
    %c0_i32_0 = arith.constant 0 : i32
    return %arg0, %c0_i32 : i32, i32
  }
}

</mosaic_0001>

<bundles_post_ra>
// kernel: tpu_custom_call.1
= control target key start
LH: loop header
LB: loop body
LE: loop exit
PB: predicated region body
PF: predicated region fallthrough
CT: control target
= control target key end

     0   :  { %vm83_vm0 = vcmask 130048   ;;  %v477_v0 = vmov 0   ;;  %vm244_vm9 = vcmask 523264   ;;  %vm325_vm14 = vcmask 261120   ;;  %s642_s2 = inlined_call_operand.vmem [shape: f32[64,1], index: 2, kind: input, shape index: {}]   ;;  %s643_s0 = inlined_call_operand.vmem [shape: f32[8,16], index: 0, kind: input, shape index: {}]   ;;  %s644_s1 = inlined_call_operand.vmem [shape: f32[64,16], index: 1, kind: input, shape index: {}]   ;;  %s645_s4 = inlined_call_operand.vmem [shape: f32[32,1], index: 4, kind: input, shape index: {}]   ;;  %s646_s6 = inlined_call_operand.vmem [shape: f32[8,1], index: 6, kind: input, shape index: {}]   ;;  %s647_s3 = inlined_call_operand.vmem [shape: f32[32,64], index: 3, kind: input, shape index: {}]   ;;  %s648_s5 = inlined_call_operand.vmem [shape: f32[8,32], index: 5, kind: input, shape index: {}]   ;;  %s649_s7 = inlined_call_operand.vmem [shape: f32[8,4], index: 7, kind: output, shape index: {}]  }
   0x1   :  { %447 = vset.pattern.permute.xlu1 %v477_v0  ;;  %v40_v1 = vld [vmem:[%s642_s2 + $0x28] sm:$0xff]  ;;  %v26_v2 = vld [vmem:[%s643_s0] sm:$0xff]  ;;  %446 = vset.pattern.permute.xlu0 %v477_v0  ;;  %v42_v4 = vld [vmem:[%s642_s2 + $0x38] sm:$0xff] }
   0x2   :  { %70 = vperm.xlu1 %447, %v40_v1   ;;  %409 = vmatpush.xpose.msk.msra.mxu0 %vm83_vm0, %v26_v2  ;;  %v27_v3 = vld [vmem:[%s644_s1] sm:$0xff]  ;;  %v38_v7 = vld [vmem:[%s642_s2 + $0x18] sm:$0xff]  ;;  %v41_v8 = vld [vmem:[%s642_s2 + $0x30] sm:$0xff] }
   0x3   :  { %435 = vmatpush.xpose.msk.msra.mxu3 %vm83_vm0, %v26_v2  ;;  %v31_v5 = vld [vmem:[%s644_s1 + $0x20] sm:$0xff]  ;;  %80 = vperm.xlu0 %446, %v42_v4   ;;  %v28_v9 = vld [vmem:[%s644_s1 + $0x8] sm:$0xff]  ;;  %v37_v11 = vld [vmem:[%s642_s2 + $0x10] sm:$0xff] }
   0x4   :  { %448 = vset.pattern.permute.xlu2 %v477_v0  ;;  %v39_v6 = vld [vmem:[%s642_s2 + $0x20] sm:$0xff]  ;;  %v32_v10 = vld [vmem:[%s644_s1 + $0x28] sm:$0xff]  ;;  %v29_v14 = vld [vmem:[%s644_s1 + $0x10] sm:$0xff] }
   0x5   :  { %410 = vmatmul.msk.f32.vlgmr.msra.gmra.mxu0 %vm83_vm0, %v27_v3  ;;  %60 = vperm.xlu2 %448, %v38_v7   ;;  %v35_v12 = vld [vmem:[%s642_s2] sm:$0xff]  ;;  %v36_v13 = vld [vmem:[%s642_s2 + $0x8] sm:$0xff]  ;;  %v33_v15 = vld [vmem:[%s644_s1 + $0x30] sm:$0xff] }
   0x6   :  { %414 = vmatmul.msk.f32.vlgmr.msra.gmra.mxu3 %vm83_vm0, %v31_v5  ;;  %v223_v16 = vld [vmem:[%s645_s4 + $0x18] sm:$0xff]  ;;  %v221_v17 = vld [vmem:[%s645_s4 + $0x8] sm:$0xff]  ;;  %v222_v18 = vld [vmem:[%s645_s4 + $0x10] sm:$0xff] }
   0x7   :  { %v30_v19 = vld [vmem:[%s644_s1 + $0x18] sm:$0xff]  ;;  %v220_v21 = vld [vmem:[%s645_s4] sm:$0xff] }
   0x8   :  { %v34_v20 = vld [vmem:[%s644_s1 + $0x38] sm:$0xff]  ;;  %v319_v22 = vld [vmem:[%s646_s6] sm:$0xff] }
   0xa   :  { %65 = vperm.xlu1 %447, %v39_v6  }
   0xb   :  { %75 = vperm.xlu0 %446, %v41_v8  }
   0xd   :  { %411 = vmatmul.msk.f32.gmra.mxu0 %vm83_vm0, %v28_v9  ;;  %55 = vperm.xlu2 %448, %v37_v11  }
   0xe   :  { %415 = vmatmul.msk.f32.gmra.mxu3 %vm83_vm0, %v32_v10 }
  0x12   :  { %45 = vperm.xlu1 %447, %v35_v12  }
  0x13   :  { %50 = vperm.xlu0 %446, %v36_v13  }
  0x15   :  { %412 = vmatmul.msk.f32.gmra.mxu0 %vm83_vm0, %v29_v14  ;;  %241 = vperm.xlu2 %448, %v223_v16  }
  0x16   :  { %416 = vmatmul.msk.f32.gmra.mxu3 %vm83_vm0, %v33_v15 }
  0x1a   :  { %231 = vperm.xlu1 %447, %v221_v17  }
  0x1b   :  { %236 = vperm.xlu0 %446, %v222_v18  }
  0x1d   :  { %413 = vmatmul.msk.f32.gmra.mxu0 %vm83_vm0, %v30_v19  ;;  %226 = vperm.xlu2 %448, %v220_v21  }
  0x1e   :  { %417 = vmatmul.msk.f32.gmra.mxu3 %vm83_vm0, %v34_v20 }
  0x23   :  { %322 = vperm.xlu0 %446, %v319_v22  }
  0x5f   :  { %v61_v28 = vpop.permute.xlu2 %60 }
  0x67   :  { %v56_v38 = vpop.permute.xlu2 %55 }
  0x74   :  { %v71_v26 = vpop.permute.xlu1 %70 }
  0x75   :  { %v81_v24 = vpop.permute.xlu0 %80 }
  0x7c   :  { %v66_v32 = vpop.permute.xlu1 %65 }
  0x7d   :  { %v76_v31 = vpop.permute.xlu0 %75 }
  0x82   :  { %v128_v23 = vpop.f32.mrf.mxu0 }
  0x84   :  { %v46_v43 = vpop.permute.xlu1 %45 }
  0x85   :  { %v51_v42 = vpop.permute.xlu0 %50  ;;  %v607_v50 = vadd.f32 %v128_v23, %v46_v43  ;;  %v242_v43 = vpop.permute.xlu2 %241 }
  0x87   :  { %v152_v58 = vmin.f32 %v607_v50, 0.0  ;;  %vm192_vm8 = vcmp.gt.f32.partialorder %v607_v50, 0.0 }
  0x89   :  { %v140_v25 = vpop.f32.mrf.mxu3  ;;  %v160_v0 = vmul.f32 1.442695, %v152_v58 }
  0x8a   :  { %v131_v27 = vpop.f32.mrf.mxu0  ;;  %v596_v35 = vadd.f32 %v140_v25, %v66_v32 }
  0x8b   :  { %v605_v48 = vadd.f32 %v131_v27, %v51_v42  ;;  %v218_v42 = vld [vmem:[%s647_s3 + $0x10] sm:$0xff] }
  0x8c   :  { %v156_v44 = vmin.f32 %v596_v35, 0.0  ;;  %vm196_vm4 = vcmp.gt.f32.partialorder %v596_v35, 0.0 }
  0x8d   :  { %v153_v56 = vmin.f32 %v605_v48, 0.0  ;;  %vm193_vm7 = vcmp.gt.f32.partialorder %v605_v48, 0.0  ;;  %v237_v58 = vpop.permute.xlu0 %236 }
  0x8e   :  { %v168_v52 = vmul.f32 1.442695, %v156_v44 }
  0x8f   :  { %v162_v62 = vmul.f32 1.442695, %v153_v56 }
  0x91   :  { %v143_v29 = vpop.f32.mrf.mxu3 }
  0x92   :  { %v134_v30 = vpop.f32.mrf.mxu0  ;;  %v594_v33 = vadd.f32 %v143_v29, %v71_v26 }
  0x93   :  { %v602_v45 = vadd.f32 %v134_v30, %v56_v38 }
  0x94   :  { %v157_v40 = vmin.f32 %v594_v33, 0.0  ;;  %vm197_vm3 = vcmp.gt.f32.partialorder %v594_v33, 0.0 }
  0x95   :  { %v154_v53 = vmin.f32 %v602_v45, 0.0  ;;  %vm194_vm6 = vcmp.gt.f32.partialorder %v602_v45, 0.0 }
  0x96   :  { %v170_v49 = vmul.f32 1.442695, %v157_v40  ;;  %v219_v40 = vld [vmem:[%s647_s3 + $0x18] sm:$0xff] }
  0x97   :  { %v164_v59 = vmul.f32 1.442695, %v154_v53 }
  0x99   :  { %v146_v34 = vpop.f32.mrf.mxu3 }
  0x9a   :  { %v147_v36 = vadd.f32 %v146_v34, %v76_v31  ;;  %v137_v37 = vpop.f32.mrf.mxu0 }
  0x9b   :  { %v598_v39 = vadd.f32 %v137_v37, %v61_v28 }
  0x9c   :  { %v158_v41 = vmin.f32 %v147_v36, 0.0  ;;  %vm198_vm2 = vcmp.gt.f32.partialorder %v147_v36, 0.0 }
  0x9d   :  { %v155_v47 = vmin.f32 %v598_v39, 0.0  ;;  %vm195_vm5 = vcmp.gt.f32.partialorder %v598_v39, 0.0 }
  0x9e   :  { %v172_v46 = vmul.f32 1.442695, %v158_v41  ;;  %v217_v41 = vld [vmem:[%s647_s3 + $0x8] sm:$0xff] }
  0x9f   :  { %v166_v55 = vmul.f32 1.442695, %v155_v47 }
  0xa0   :  { %449 = vpow2.f32 %v172_v46 }
  0xa1   :  { %v149_v51 = vpop.f32.mrf.mxu3  ;;  %451 = vpow2.f32 %v170_v49  ;;  %v232_v49 = vpop.permute.xlu1 %231 }
  0xa2   :  { %v150_v54 = vadd.f32 %v149_v51, %v81_v24  ;;  %453 = vpow2.f32 %v168_v52 }
  0xa3   :  { %455 = vpow2.f32 %v166_v55 }
  0xa4   :  { %v159_v57 = vmin.f32 %v150_v54, 0.0  ;;  %vm199_vm1 = vcmp.gt.f32.partialorder %v150_v54, 0.0 }
  0xa6   :  { %v174_v60 = vmul.f32 1.442695, %v159_v57  ;;  %v450_v61 = vpop.eup %449 }
  0xa7   :  { %v452_v63 = vpop.eup %451  ;;  %v424_v1 = vadd.f32 -1.0, %v450_v61 }
  0xa8   :  { %457 = vpow2.f32 %v174_v60  ;;  %v454_v2 = vpop.eup %453  ;;  %v423_v4 = vadd.f32 -1.0, %v452_v63 }
  0xa9   :  { %459 = vpow2.f32 %v164_v59  ;;  %v456_v3 = vpop.eup %455  ;;  %v190_v7 = vmul.f32 1.6732632, %v424_v1  ;;  %v422_v8 = vadd.f32 -1.0, %v454_v2 }
  0xaa   :  { %461 = vpow2.f32 %v162_v62  ;;  %v189_v11 = vmul.f32 1.6732632, %v423_v4  ;;  %v421_v12 = vadd.f32 -1.0, %v456_v3 }
  0xab   :  { %463 = vpow2.f32 %v160_v0  ;;  %v206_v15 = vsel %vm198_vm2, %v147_v36, %v190_v7  ;;  %v188_v16 = vmul.f32 1.6732632, %v422_v8 }
  0xac   :  { %v205_v20 = vsel %vm197_vm3, %v594_v33, %v189_v11  ;;  %v187_v21 = vmul.f32 1.6732632, %v421_v12  ;;  %v214_v23 = vmul.f32 1.050701, %v206_v15 }
  0xad   :  { %v204_v24 = vsel %vm196_vm4, %v596_v35, %v188_v16  ;;  %v213_v27 = vmul.f32 1.050701, %v205_v20  ;;  %v323_v20 = vpop.permute.xlu0 %322  ;;  %vm403_vm4 = vcmask 31744  }
  0xae   :  { %v458_v5 = vpop.eup %457  ;;  %v203_v28 = vsel %vm195_vm5, %v598_v39, %v187_v21  ;;  %v212_v30 = vmul.f32 1.050701, %v204_v24  ;;  %v216_v39 = vld [vmem:[%s647_s3] sm:$0xff] }
  0xaf   :  { %v425_v6 = vadd.f32 -1.0, %v458_v5  ;;  %v460_v9 = vpop.eup %459  ;;  %v211_v33 = vmul.f32 1.050701, %v203_v28 }
  0xb0   :  { %v462_v13 = vpop.eup %461  ;;  %v420_v17 = vadd.f32 -1.0, %v460_v9 }
  0xb1   :  { %v191_v10 = vmul.f32 1.6732632, %v425_v6  ;;  %v464_v18 = vpop.eup %463  ;;  %v419_v22 = vadd.f32 -1.0, %v462_v13 }
  0xb2   :  { %v186_v25 = vmul.f32 1.6732632, %v420_v17  ;;  %v418_v26 = vadd.f32 -1.0, %v464_v18 }
  0xb3   :  { %v207_v14 = vsel %vm199_vm1, %v150_v54, %v191_v10  ;;  %v185_v29 = vmul.f32 1.6732632, %v419_v22 }
  0xb4   :  { %v215_v19 = vmul.f32 1.050701, %v207_v14  ;;  %v202_v31 = vsel %vm194_vm6, %v602_v45, %v186_v25  ;;  %v184_v32 = vmul.f32 1.6732632, %v418_v26  ;;  %v227_v45 = vpop.permute.xlu2 %226 }
  0xb5   :  { %v201_v34 = vsel %vm193_vm7, %v605_v48, %v185_v29  ;;  %v210_v35 = vmul.f32 1.050701, %v202_v31 }
  0xb6   :  { %265 = vmatpush.msra.mxu1 %v215_v19  ;;  %436 = vmatpush.msra.mxu2 %v215_v19  ;;  %v200_v36 = vsel %vm192_vm8, %v607_v50, %v184_v32  ;;  %v209_v37 = vmul.f32 1.050701, %v201_v34  ;;  %v318_v19 = vld [vmem:[%s648_s5] sm:$0xff] }
  0xb7   :  { %v208_v38 = vmul.f32 1.050701, %v200_v36 }
  0xb8   :  { %266 = vmatpush.msra.mxu1 %v214_v23  ;;  %437 = vmatpush.msra.mxu2 %v214_v23 }
  0xba   :  { %267 = vmatpush.msra.mxu1 %v213_v27  ;;  %438 = vmatpush.msra.mxu2 %v213_v27 }
  0xbc   :  { %268 = vmatpush.msra.mxu1 %v212_v30  ;;  %439 = vmatpush.msra.mxu2 %v212_v30 }
  0xbe   :  { %269 = vmatpush.msra.mxu1 %v211_v33  ;;  %440 = vmatpush.msra.mxu2 %v211_v33 }
  0xc0   :  { %270 = vmatpush.msra.mxu1 %v210_v35  ;;  %441 = vmatpush.msra.mxu2 %v210_v35 }
  0xc2   :  { %271 = vmatpush.msra.mxu1 %v209_v37  ;;  %442 = vmatpush.msra.mxu2 %v209_v37 }
  0xc4   :  { %272 = vmatpush.msra.mxu1 %v208_v38  ;;  %443 = vmatpush.msra.mxu2 %v208_v38 }
  0xc5   :  { %426 = vmatmul.msk.f32.vlgmr.msra.gmra.mxu1 %vm244_vm9, %v216_v39  ;;  %429 = vmatmul.msk.f32.vlgmr.msra.gmra.mxu2 %vm244_vm9, %v219_v40 }
  0xcd   :  { %427 = vmatmul.msk.f32.gmra.mxu1 %vm244_vm9, %v217_v41 }
  0xd5   :  { %428 = vmatmul.msk.f32.gmra.mxu1 %vm244_vm9, %v218_v42 }
 0x142   :  { %v274_v44 = vpop.f32.mrf.mxu1 }
 0x143   :  { %v275_v47 = vadd.f32 %v274_v44, %v227_v45 }
 0x145   :  { %v286_v53 = vmin.f32 %v275_v47, 0.0  ;;  %vm306_vm13 = vcmp.gt.f32.partialorder %v275_v47, 0.0 }
 0x147   :  { %v290_v57 = vmul.f32 1.442695, %v286_v53 }
 0x148   :  { %v283_v46 = vpop.f32.mrf.mxu2 }
 0x149   :  { %v284_v48 = vadd.f32 %v283_v46, %v242_v43 }
 0x14a   :  { %v277_v50 = vpop.f32.mrf.mxu1 }
 0x14b   :  { %v289_v51 = vmin.f32 %v284_v48, 0.0  ;;  %v278_v52 = vadd.f32 %v277_v50, %v232_v49  ;;  %vm309_vm10 = vcmp.gt.f32.partialorder %v284_v48, 0.0 }
 0x14d   :  { %v296_v54 = vmul.f32 1.442695, %v289_v51  ;;  %v287_v55 = vmin.f32 %v278_v52, 0.0  ;;  %vm307_vm12 = vcmp.gt.f32.partialorder %v278_v52, 0.0 }
 0x14f   :  { %465 = vpow2.f32 %v296_v54  ;;  %v292_v56 = vmul.f32 1.442695, %v287_v55 }
 0x151   :  { %467 = vpow2.f32 %v292_v56 }
 0x152   :  { %v280_v59 = vpop.f32.mrf.mxu1  ;;  %469 = vpow2.f32 %v290_v57 }
 0x153   :  { %v281_v60 = vadd.f32 %v280_v59, %v237_v58 }
 0x155   :  { %v466_v61 = vpop.eup %465  ;;  %v288_v62 = vmin.f32 %v281_v60, 0.0  ;;  %vm308_vm11 = vcmp.gt.f32.partialorder %v281_v60, 0.0 }
 0x156   :  { %v433_v63 = vadd.f32 -1.0, %v466_v61 }
 0x157   :  { %v294_v0 = vmul.f32 1.442695, %v288_v62  ;;  %v468_v2 = vpop.eup %467 }
 0x158   :  { %v305_v1 = vmul.f32 1.6732632, %v433_v63  ;;  %v470_v4 = vpop.eup %469  ;;  %v431_v6 = vadd.f32 -1.0, %v468_v2 }
 0x159   :  { %471 = vpow2.f32 %v294_v0  ;;  %v430_v7 = vadd.f32 -1.0, %v470_v4 }
 0x15a   :  { %v313_v3 = vsel %vm309_vm10, %v284_v48, %v305_v1  ;;  %v303_v10 = vmul.f32 1.6732632, %v431_v6 }
 0x15b   :  { %v317_v5 = vmul.f32 1.050701, %v313_v3  ;;  %v302_v12 = vmul.f32 1.6732632, %v430_v7 }
 0x15c   :  { %v311_v14 = vsel %vm307_vm12, %v278_v52, %v303_v10 }
 0x15d   :  { %341 = vmatpush.msrb.mxu2 %v317_v5  ;;  %v310_v16 = vsel %vm306_vm13, %v275_v47, %v302_v12  ;;  %v315_v17 = vmul.f32 1.050701, %v311_v14 }
 0x15e   :  { %v314_v18 = vmul.f32 1.050701, %v310_v16 }
 0x15f   :  { %v472_v8 = vpop.eup %471 }
 0x160   :  { %v432_v9 = vadd.f32 -1.0, %v472_v8 }
 0x162   :  { %v304_v11 = vmul.f32 1.6732632, %v432_v9 }
 0x164   :  { %v312_v13 = vsel %vm308_vm11, %v281_v60, %v304_v11 }
 0x165   :  { %v316_v15 = vmul.f32 1.050701, %v312_v13 }
 0x167   :  { %342 = vmatpush.msrb.mxu2 %v316_v15 }
 0x169   :  { %343 = vmatpush.msrb.mxu2 %v315_v17 }
 0x16b   :  { %344 = vmatpush.msrb.mxu2 %v314_v18 }
 0x16c   :  { %434 = vmatmul.msk.f32.vlgmr.msrb.gmra.mxu2 %vm325_vm14, %v318_v19 }
 0x1ef   :  { %v346_v21 = vpop.f32.mrf.mxu2 }
 0x1f0   :  { %v347_v22 = vadd.f32 %v346_v21, %v323_v20 }
 0x1f2   :  { %v349_v23 = vand.u32 2147483647, %v347_v22  ;;  %vm368_vm3 = vcmp.ge.f32.partialorder %v347_v22, 0.0 }
 0x1f4   :  { %v350_v24 = vsub.f32 0.0, %v349_v23 }
 0x1f6   :  { %v351_v25 = vmul.f32 1.442695, %v350_v24 }
 0x1f8   :  { %473 = vpow2.f32 %v351_v25 }
 0x1fe   :  { %v474_v26 = vpop.eup %473 }
 0x1ff   :  { %v353_v27 = vadd.f32 1.0, %v474_v26 }
 0x201   :  { %475 = vrcp.f32 %v353_v27  ;;  %v365_v31 = vand.u32 2147483648, %v353_v27  ;;  %v363_v33 = vand.u32 2147483647, %v353_v27  ;;  %vm359_vm0 = vweird.f32 %v353_v27 }
 0x203   :  { %v366_v35 = vor.u32 1.1754944e-38, %v365_v31  ;;  %vm364_vm2 = vcmp.eq.f32.partialorder %v363_v33, 8.507059e+37 }
 0x207   :  { %v476_v28 = vpop.eup %475 }
 0x208   :  { %v355_v29 = vmul.f32 %v476_v28, %v353_v27  ;;  %vm360_vm15 = vweird.f32 %v476_v28 }
 0x209   :  { %vm361_vm1 = vmor %vm359_vm0, %vm360_vm15 }
 0x20a   :  { %v356_v30 = vsub.f32 1.0, %v355_v29 }
 0x20c   :  { %v357_v32 = vmul.f32 %v476_v28, %v356_v30 }
 0x20e   :  { %v358_v34 = vadd.f32 %v476_v28, %v357_v32 }
 0x210   :  { %v362_v36 = vsel %vm361_vm1, %v476_v28, %v358_v34 }
 0x211   :  { %v367_v37 = vsel %vm364_vm2, %v366_v35, %v362_v36 }
 0x212   :  { %v369_v38 = vmul.f32 %v474_v26, %v367_v37 }
 0x214   :  { %v370_v39 = vsel %vm368_vm3, %v367_v37, %v369_v38 }
 0x215   :  { %371 = vxpose.xlu1.b32.start.end [1/1] (short) (narrow) %v370_v39, 8 }
 0x2b9   :  { %v387_v40 = vpop.trf.xlu1 }
 0x2ba   :  { %404 = vst.msk [vmem:[%s649_s7] sm:$0xff] %vm403_vm4, %v387_v40 }

</bundles_post_ra>
